<compile_context>
chip_gen: v6e
topology: v6e:2x2x1
jax: 0.10.0
libtpu: 0.0.40
codegen_flags: <defaults>
</compile_context>

<pallas_src>
import functools
import math

import jax
import jax.numpy as jnp
from jax.experimental import pallas as pl
from jax.experimental.pallas import tpu as pltpu


_INV_LN2 = 1.0 / math.log(2.0)
_NEG_BIG = -1e30                    # "minus infinity" stand-in keeping 0*(x-m) finite
_VMEM_BUDGET = 20 * 1024 * 1024     # target bytes for (double-)buffered tiles
_VMEM_LIMIT = 32 * 1024 * 1024      # scoped-VMEM request; safe on v5e/v6e/v7x


# ---------------------------------------------------------------------------
# Tile-size helpers: size tiles from an explicit VMEM budget (accounting for
# double-buffering) instead of a hard cap; respect the (8, 128) block rules.
# ---------------------------------------------------------------------------
def _entropy_tiles(n, d):
    """(tile_n, tile_d) for the entropy kernel."""
    if d <= 128:
        tile_d = d                          # full dim -> always a legal block
    else:
        # >=2 lane-aligned D tiles (<=512 wide) so the "parallel" grid axis can
        # be sharded across both TensorCores on v7x.
        lane_blocks = -(-d // 128)
        tile_d = 128 * min(4, -(-lane_blocks // 2))
    bytes_per_row = tile_d * 4 * 2          # f32 x tile, double-buffered
    if n <= 8:
        return n, tile_d
    t = max(8, (_VMEM_BUDGET // bytes_per_row) // 8 * 8)
    return (n if t >= n else t), tile_d


def _mapping_row_tile(n, input_dim, output_dim, dp):
    """Row tile for the mapping kernel from the VMEM budget left after the
    resident (concatenated) weights/bias."""
    resident = input_dim * (2 * dp) * 2 * 2     # bf16 weights (x2 covers fallback dbl-buffer)
    resident += 8 * (2 * dp) * 4 * 2            # f32 bias, sublane-padded
    budget = max(_VMEM_BUDGET - resident, 2 * 1024 * 1024)
    bytes_per_row = input_dim * 4 * 2 + output_dim * 4 * 2   # f32 x + f32 out, dbl-buffered
    if n <= 8:
        return n
    t = max(8, budget // bytes_per_row)
    if n > 16:
        t = min(t, -(-n // 2))      # >=2 grid steps -> v7x shards the parallel axis
    t = max(8, (t // 8) * 8)
    return n if t >= n else t


# ---------------------------------------------------------------------------
# Kernel 1: column-wise entropy of the row-softmax (online / tiled).
#   H_col = (ln s - t / s) / ln 2,  s = sum e^(x-m),  t = sum e^(x-m)*(x-m)
# ---------------------------------------------------------------------------
def _entropy_kernel(x_ref, ent_ref, m_ref, s_ref, t_ref, *, n_rows, tile_n, ragged):
    ni = pl.program_id(1)

    @pl.when(ni == 0)
    def _init():
        m_ref[...] = jnp.full_like(m_ref, _NEG_BIG)
        s_ref[...] = jnp.zeros_like(s_ref)
        t_ref[...] = jnp.zeros_like(t_ref)

    x = x_ref[...].astype(jnp.float32)                          # [tile_n, tile_d]
    if ragged:
        # Mask padded rows so they contribute exp(.) = 0.  [tile_n, 1] iota
        # broadcasts over lanes (cheaper than a full-tile iota).
        row = ni * tile_n + jax.lax.broadcasted_iota(jnp.int32, (x.shape[0], 1), 0)
        x = jnp.where(row < n_rows, x, _NEG_BIG)

    m_old = m_ref[...]
    s_old = s_ref[...]
    t_old = t_ref[...]

    m_new = jnp.maximum(m_old, jnp.max(x, axis=0, keepdims=True))    # [1, tile_d]
    e = jnp.exp(x - m_new)                                           # masked rows -> 0
    blk_s = jnp.sum(e, axis=0, keepdims=True)
    blk_t = jnp.sum(e * (x - m_new), axis=0, keepdims=True)
    alpha = jnp.exp(m_old - m_new)

    m_ref[...] = m_new
    s_ref[...] = alpha * s_old + blk_s
    t_ref[...] = alpha * (t_old + (m_old - m_new) * s_old) + blk_t

    @pl.when(ni == pl.num_programs(1) - 1)
    def _finalize():
        # NOTE: on a ragged last D tile the out-of-range lanes hold garbage;
        # all math here is per-lane and the HBM writeback masks those lanes.
        s = s_ref[...]
        ent_ref[...] = (jnp.log(s) - t_ref[...] * pl.reciprocal(s)) * _INV_LN2


def column_entropy(x):
    n, d = x.shape
    tile_n, tile_d = _entropy_tiles(n, d)
    grid = (pl.cdiv(d, tile_d), pl.cdiv(n, tile_n))
    out = pl.pallas_call(
        functools.partial(_entropy_kernel, n_rows=n, tile_n=tile_n,
                          ragged=(n % tile_n != 0)),
        out_shape=jax.ShapeDtypeStruct((1, d), jnp.float32),
        grid=grid,
        in_specs=[pl.BlockSpec((tile_n, tile_d), lambda di, ni: (ni, di))],
        out_specs=pl.BlockSpec((1, tile_d), lambda di, ni: (0, di)),
        scratch_shapes=[
            pltpu.VMEM((1, tile_d), jnp.float32),   # running max
            pltpu.VMEM((1, tile_d), jnp.float32),   # running sum(e)
            pltpu.VMEM((1, tile_d), jnp.float32),   # running sum(e*(x-m))
        ],
        compiler_params=pltpu.CompilerParams(
            dimension_semantics=("parallel", "arbitrary"),
            vmem_limit_bytes=_VMEM_LIMIT),
    )(x)
    return out[0]                                               # [d]


# ---------------------------------------------------------------------------
# Kernel 2: fused mapping
#   y = x(bf16) @ [W_inf_scat | W_red_scat](bf16) + [b_inf | b_red]
#   out = tanh(y[:, :dp]) + tanh(y[:, dp:2*dp]), stored unpadded.
# ---------------------------------------------------------------------------
def _mapping_kernel(x_ref, w_ref, b_ref, o_ref, *, dp, out_dim):
    x = x_ref[...].astype(jnp.bfloat16)
    y = jnp.dot(x, w_ref[...], preferred_element_type=jnp.float32) + b_ref[...]
    z = jnp.tanh(y[:, :dp]) + jnp.tanh(y[:, dp:])
    o_ref[...] = z[:, :out_dim].astype(o_ref.dtype)


def separate_mapping_forward(x, params, output_dim):
    """x: [N, input_dim] float32.  Returns [N, output_dim] float32."""
    x = x.astype(jnp.float32)
    n, input_dim = x.shape
    if not (0 < output_dim <= input_dim):
        raise ValueError("need 0 < output_dim <= input_dim")
    red_dim = input_dim - output_dim

    # 1) column entropies (Pallas) + descending argsort (tiny, plain JAX glue).
    #    NOTE: tie-breaking of equal entropies may differ from torch.argsort.
    ent = column_entropy(x)                                  # [input_dim]
    sorted_idx = jnp.argsort(-ent)                           # descending

    # 2) Fold the column gather into the (tiny) weights and fuse both Linears:
    #      x[:, idx_inf] @ W_inf  and  x[:, idx_red] @ W_red
    #   == x @ scatter_rows(concat_rows([W_inf | 0], [0 | W_red]), sorted_idx)
    #    dp is the lane-aligned half-width; dp == output_dim when it is already
    #    a multiple of 128 (then nothing is padded anywhere).
    dp = ((output_dim + 127) // 128) * 128
    pad = dp - output_dim
    w_inf = jnp.pad(params["w_inf"].astype(jnp.float32), ((0, 0), (0, pad)))
    w_red = jnp.pad(params["w_red"].astype(jnp.float32), ((0, 0), (0, pad)))
    rows_inf = jnp.concatenate(
        [w_inf, jnp.zeros((output_dim, dp), jnp.float32)], axis=1)
    rows_red = jnp.concatenate(
        [jnp.zeros((red_dim, dp), jnp.float32), w_red], axis=1)
    w_cat = (jnp.zeros((input_dim, 2 * dp), jnp.float32)
             .at[sorted_idx].set(jnp.concatenate([rows_inf, rows_red], axis=0))
             .astype(jnp.bfloat16))                          # [input_dim, 2*dp] bf16
    b_cat = jnp.concatenate(
        [jnp.pad(params["b_inf"].astype(jnp.float32), ((0, 0), (0, pad))),
         jnp.pad(params["b_red"].astype(jnp.float32), ((0, 0), (0, pad)))],
        axis=1)                                              # [1, 2*dp] f32

    # 3) Row-tiled fused mapping kernel; weights/bias resident across row tiles.
    # TODO(synk): add a K (input_dim) grid axis with an f32 accumulator when
    # input_dim * 2*dp * 2 bytes approaches the scoped-VMEM limit (v7x 64 MiB).
    tile_n = _mapping_row_tile(n, input_dim, output_dim, dp)
    grid = (pl.cdiv(n, tile_n),)
    kernel = functools.partial(_mapping_kernel, dp=dp, out_dim=output_dim)

    def run(resident_mode):
        res_kw = {} if resident_mode is None else {"pipeline_mode": resident_mode}
        return pl.pallas_call(
            kernel,
            out_shape=jax.ShapeDtypeStruct((n, output_dim), jnp.float32),
            grid=grid,
            in_specs=[
                pl.BlockSpec((tile_n, input_dim), lambda i: (i, 0)),
                pl.BlockSpec((input_dim, 2 * dp), lambda i: (0, 0), **res_kw),
                pl.BlockSpec((1, 2 * dp), lambda i: (0, 0), **res_kw),
            ],
            out_specs=pl.BlockSpec((tile_n, output_dim), lambda i: (i, 0)),
            compiler_params=pltpu.CompilerParams(
                dimension_semantics=("parallel",),
                vmem_limit_bytes=_VMEM_LIMIT),
        )(x, w_cat, b_cat)

    try:
        # Constant index_map never re-fetches; single-buffer the resident
        # weights/bias to halve their VMEM footprint (matters on v7x).
        return run(pl.Buffered(1))
    except Exception:
        # Fall back to default double-buffering if Buffered(1) is unsupported.
        return run(None)


# ---------------------------------------------------------------------------
# Deterministic parameter init (mirrors nn.Linear default U(-1/sqrt(in), +1/sqrt(in))),
# stored pre-transposed as [in_dim, out_dim].
# ---------------------------------------------------------------------------
def init_params(key, input_dim, output_dim):
    red_dim = input_dim - output_dim
    k1, k2, k3, k4 = jax.random.split(key, 4)
    lim_i = 1.0 / jnp.sqrt(output_dim)
    lim_r = 1.0 / jnp.sqrt(max(red_dim, 1))
    return {
        "w_inf": jax.random.uniform(k1, (output_dim, output_dim), jnp.float32,
                                    -lim_i, lim_i),
        "b_inf": jax.random.uniform(k2, (1, output_dim), jnp.float32, -lim_i, lim_i),
        "w_red": jax.random.uniform(k3, (red_dim, output_dim), jnp.float32,
                                    -lim_r, lim_r),
        "b_red": jax.random.uniform(k4, (1, output_dim), jnp.float32, -lim_r, lim_r),
    }


# ---------------------------------------------------------------------------
# Pure-JAX reference for verification.
# ---------------------------------------------------------------------------
def reference_forward(x, params, output_dim):
    p = jax.nn.softmax(x, axis=0)
    ent = -jnp.sum(p * (jnp.log(p) / jnp.log(2.0)), axis=0)
    sorted_idx = jnp.argsort(-ent)
    x_inf = jnp.take(x, sorted_idx[:output_dim], axis=1)
    x_red = jnp.take(x, sorted_idx[output_dim:], axis=1)
    inf = jnp.tanh(x_inf @ params["w_inf"] + params["b_inf"])
    red = jnp.tanh(x_red @ params["w_red"] + params["b_red"])
    return inf + red


if __name__ == "__main__":
    N, INPUT_DIM, OUTPUT_DIM = 8, 32, 16

    key = jax.random.PRNGKey(0)
    kx, kp = jax.random.split(key)
    x = jax.random.normal(kx, (N, INPUT_DIM), dtype=jnp.float32)
    params = init_params(kp, INPUT_DIM, OUTPUT_DIM)

    out = separate_mapping_forward(x, params, OUTPUT_DIM)
    out = jax.block_until_ready(out)

    ref = reference_forward(x, params, OUTPUT_DIM)
    assert out.shape == (N, OUTPUT_DIM)
    # bf16 MXU feed in the mapping kernel -> tolerance loosened accordingly.
    assert jnp.allclose(out, ref, atol=2e-2, rtol=2e-2), "mismatch vs reference"

    print("KERNEL_OK")
</pallas_src>

<mosaic_0001>
module attributes {stable_mosaic.version = 11 : i64} {
  func.func @_entropy_kernel(%arg0: i32, %arg1: i32, %arg2: memref<8x32xf32, #tpu.memory_space<vmem>>, %arg3: memref<1x32xf32, #tpu.memory_space<vmem>>, %arg4: memref<1x32xf32, #tpu.memory_space<vmem>>, %arg5: memref<1x32xf32, #tpu.memory_space<vmem>>, %arg6: memref<1x32xf32, #tpu.memory_space<vmem>>) attributes {dimension_semantics = [#tpu.dimension_semantics<parallel>, #tpu.dimension_semantics<arbitrary>], iteration_bounds = array<i64: 1, 1>, scalar_prefetch = 0 : i64, scratch_operands = 3 : i64, tpu.core_type = #tpu.core_type<tc>, window_params = [{transform_indices = @transform_0, window_bounds = array<i64: 8, 32>}, {transform_indices = @transform_1, window_bounds = array<i64: 1, 32>}]} {
    %c0_i32 = arith.constant 0 : i32
    %0 = arith.cmpi eq, %arg1, %c0_i32 : i32
    %1 = arith.extui %0 : i1 to i32
    %c0_i32_0 = arith.constant 0 : i32
    %2 = arith.cmpi ne, %1, %c0_i32_0 : i32
    scf.if %2 {
      %cst_18 = arith.constant -1.000000e+30 : f32
      %35 = vector.broadcast %cst_18 : f32 to vector<1x32xf32>
      %c0_19 = arith.constant 0 : index
      %c0_20 = arith.constant 0 : index
      %36 = vector.load %arg4[%c0_19, %c0_20] : memref<1x32xf32, #tpu.memory_space<vmem>>, vector<1x32xf32>
      tpu.vector_store %arg4[%c0_19, %c0_20], %35 {strides = array<i32>} : memref<1x32xf32, #tpu.memory_space<vmem>>, vector<1x32xf32>,
      %cst_21 = arith.constant 0.000000e+00 : f32
      %37 = vector.broadcast %cst_21 : f32 to vector<1x32xf32>
      %c0_22 = arith.constant 0 : index
      %c0_23 = arith.constant 0 : index
      %38 = vector.load %arg5[%c0_22, %c0_23] : memref<1x32xf32, #tpu.memory_space<vmem>>, vector<1x32xf32>
      tpu.vector_store %arg5[%c0_22, %c0_23], %37 {strides = array<i32>} : memref<1x32xf32, #tpu.memory_space<vmem>>, vector<1x32xf32>,
      %cst_24 = arith.constant 0.000000e+00 : f32
      %39 = vector.broadcast %cst_24 : f32 to vector<1x32xf32>
      %c0_25 = arith.constant 0 : index
      %c0_26 = arith.constant 0 : index
      %40 = vector.load %arg6[%c0_25, %c0_26] : memref<1x32xf32, #tpu.memory_space<vmem>>, vector<1x32xf32>
      tpu.vector_store %arg6[%c0_25, %c0_26], %39 {strides = array<i32>} : memref<1x32xf32, #tpu.memory_space<vmem>>, vector<1x32xf32>,
    } else {
    }
    %c0 = arith.constant 0 : index
    %c0_1 = arith.constant 0 : index
    %3 = vector.load %arg2[%c0, %c0_1] : memref<8x32xf32, #tpu.memory_space<vmem>>, vector<8x32xf32>
    %c0_2 = arith.constant 0 : index
    %c0_3 = arith.constant 0 : index
    %4 = vector.load %arg4[%c0_2, %c0_3] : memref<1x32xf32, #tpu.memory_space<vmem>>, vector<1x32xf32>
    %c0_4 = arith.constant 0 : index
    %c0_5 = arith.constant 0 : index
    %5 = vector.load %arg5[%c0_4, %c0_5] : memref<1x32xf32, #tpu.memory_space<vmem>>, vector<1x32xf32>
    %c0_6 = arith.constant 0 : index
    %c0_7 = arith.constant 0 : index
    %6 = vector.load %arg6[%c0_6, %c0_7] : memref<1x32xf32, #tpu.memory_space<vmem>>, vector<1x32xf32>
    %cst = arith.constant dense<0xFF800000> : vector<32xf32>
    %7 = vector.multi_reduction <maximumf>, %3, %cst [0] : vector<8x32xf32> to vector<32xf32>
    %8 = vector.shape_cast %7 : vector<32xf32> to vector<1x32xf32>
    %9 = arith.maximumf %4, %8 : vector<1x32xf32>
    %10 = vector.broadcast %9 : vector<1x32xf32> to vector<8x32xf32>
    %11 = arith.subf %3, %10 : vector<8x32xf32>
    %12 = math.exp %11 : vector<8x32xf32>
    %cst_8 = arith.constant dense<0.000000e+00> : vector<32xf32>
    %13 = vector.multi_reduction <add>, %12, %cst_8 [0] : vector<8x32xf32> to vector<32xf32>
    %14 = vector.shape_cast %13 : vector<32xf32> to vector<1x32xf32>
    %15 = vector.broadcast %9 : vector<1x32xf32> to vector<8x32xf32>
    %16 = arith.subf %3, %15 : vector<8x32xf32>
    %17 = arith.mulf %12, %16 : vector<8x32xf32>
    %cst_9 = arith.constant dense<0.000000e+00> : vector<32xf32>
    %18 = vector.multi_reduction <add>, %17, %cst_9 [0] : vector<8x32xf32> to vector<32xf32>
    %19 = vector.shape_cast %18 : vector<32xf32> to vector<1x32xf32>
    %20 = arith.subf %4, %9 : vector<1x32xf32>
    %21 = math.exp %20 : vector<1x32xf32>
    %c0_10 = arith.constant 0 : index
    %c0_11 = arith.constant 0 : index
    %22 = vector.load %arg4[%c0_10, %c0_11] : memref<1x32xf32, #tpu.memory_space<vmem>>, vector<1x32xf32>
    tpu.vector_store %arg4[%c0_10, %c0_11], %9 {strides = array<i32>} : memref<1x32xf32, #tpu.memory_space<vmem>>, vector<1x32xf32>,
    %23 = arith.mulf %21, %5 : vector<1x32xf32>
    %24 = arith.addf %23, %14 : vector<1x32xf32>
    %c0_12 = arith.constant 0 : index
    %c0_13 = arith.constant 0 : index
    %25 = vector.load %arg5[%c0_12, %c0_13] : memref<1x32xf32, #tpu.memory_space<vmem>>, vector<1x32xf32>
    tpu.vector_store %arg5[%c0_12, %c0_13], %24 {strides = array<i32>} : memref<1x32xf32, #tpu.memory_space<vmem>>, vector<1x32xf32>,
    %26 = arith.subf %4, %9 : vector<1x32xf32>
    %27 = arith.mulf %26, %5 : vector<1x32xf32>
    %28 = arith.addf %6, %27 : vector<1x32xf32>
    %29 = arith.mulf %21, %28 : vector<1x32xf32>
    %30 = arith.addf %29, %19 : vector<1x32xf32>
    %c0_14 = arith.constant 0 : index
    %c0_15 = arith.constant 0 : index
    %31 = vector.load %arg6[%c0_14, %c0_15] : memref<1x32xf32, #tpu.memory_space<vmem>>, vector<1x32xf32>
    tpu.vector_store %arg6[%c0_14, %c0_15], %30 {strides = array<i32>} : memref<1x32xf32, #tpu.memory_space<vmem>>, vector<1x32xf32>,
    %c0_i32_16 = arith.constant 0 : i32
    %32 = arith.cmpi eq, %arg1, %c0_i32_16 : i32
    %33 = arith.extui %32 : i1 to i32
    %c0_i32_17 = arith.constant 0 : i32
    %34 = arith.cmpi ne, %33, %c0_i32_17 : i32
    scf.if %34 {
      %c0_18 = arith.constant 0 : index
      %c0_19 = arith.constant 0 : index
      %35 = vector.load %arg5[%c0_18, %c0_19] : memref<1x32xf32, #tpu.memory_space<vmem>>, vector<1x32xf32>
      %36 = math.log %35 : vector<1x32xf32>
      %c0_20 = arith.constant 0 : index
      %c0_21 = arith.constant 0 : index
      %37 = vector.load %arg6[%c0_20, %c0_21] : memref<1x32xf32, #tpu.memory_space<vmem>>, vector<1x32xf32>
      %38 = tpu.reciprocal %35 : vector<1x32xf32> -> vector<1x32xf32>
      %39 = arith.mulf %37, %38 : vector<1x32xf32>
      %40 = arith.subf %36, %39 : vector<1x32xf32>
      %cst_22 = arith.constant 1.44269502 : f32
      %41 = vector.broadcast %cst_22 : f32 to vector<1x32xf32>
      %42 = arith.mulf %40, %41 : vector<1x32xf32>
      %c0_23 = arith.constant 0 : index
      %c0_24 = arith.constant 0 : index
      %43 = vector.load %arg3[%c0_23, %c0_24] : memref<1x32xf32, #tpu.memory_space<vmem>>, vector<1x32xf32>
      tpu.vector_store %arg3[%c0_23, %c0_24], %42 {strides = array<i32>} : memref<1x32xf32, #tpu.memory_space<vmem>>, vector<1x32xf32>,
    } else {
    }
    return
  }
  func.func @transform_0(%arg0: i32, %arg1: i32) -> (i32, i32) {
    %c0_i32 = arith.constant 0 : i32
    return %arg1, %arg0 : i32, i32
  }
  func.func @transform_1(%arg0: i32, %arg1: i32) -> (i32, i32) {
    %c0_i32 = arith.constant 0 : i32
    %c0_i32_0 = arith.constant 0 : i32
    return %c0_i32, %arg0 : i32, i32
  }
}

</mosaic_0001>

<bundles_post_ra>
// kernel: tpu_custom_call.1
= control target key start
LH: loop header
LB: loop body
LE: loop exit
PB: predicated region body
PF: predicated region fallthrough
CT: control target
= control target key end

     0   :  { %6 = vsyncpa [#allocation6], 0  ;;  %s192_s0 = inlined_call_operand.hbm [shape: f32[8,32], index: 0, kind: input, shape index: {}]   ;;  %s193_s1 = inlined_call_operand.hbm [shape: f32[1,32], index: 1, kind: output, shape index: {}]  }
   0x1   :  { %7 = vsyncpa [#allocation7], 0  ;;  %s162_s6 = smov [#allocation5]  }
   0x2   :  { %s14_s7 = sshll.u32 %s162_s6, 4  ;;  %s15_s7 = int_to_ptr.vmem [resolvable:$true] %s14_s7 }
   0x3   :  { %s126_s8 = scalar_lea.vmem %s15_s7, 128  ;;  %p131_p1 = scmp.lt.s32.totalorder %s15_s7, %s15_s7 }
   0x4   :  { %p127_p0 = scmp.ne.s32.totalorder %s15_s7, %s126_s8  ;;  %p132_p2 = scmp.lt.s32.totalorder %s126_s8, %s126_s8 }
   0x6   :  { %p133_p3 = por %p132_p2, %p131_p1 }
   0x8   :  { %p134_p4 = pnand %p133_p3, %p127_p0 }
   0xa   :  { %137 = shalt.err (!%p134_p4)
}
   0xb   :  { %17 = dma.hbm_to_vmem [thread:$0]  %s192_s0, 128, %s15_s7, [#allocation6]  }
   0xc   :  { %158 = dma.done.wait [#allocation6], 128  }
   0xd   :  { %159 = vsyncadd [#allocation6], 4294967168  ;;  %vm25_vm0 = vcmask 253952   ;;  %v163_v0 = vmov -1e+30   ;;  %v164_v1 = vmov 0.0   ;;  %v43_v6 = vlaneseq }
   0xe   :  { %26 = vst.msk [vmem:[#allocation2] sm:$0x1] %vm25_vm0, %v163_v0  ;;  %27 = vst.msk [vmem:[#allocation3] sm:$0x1] %vm25_vm0, %v164_v1  ;;  %vm33_vm1 = vcmask 261120   ;;  %v29_v2 = vld [vmem:[#allocation5] sm:$0xff] }
   0xf   :  { %28 = vst.msk [vmem:[#allocation4] sm:$0x1] %vm25_vm0, %v164_v1  ;;  %v34_v3 = vsel %vm33_vm1, %v29_v2, -inf  ;;  %v44_v9 = vshrl.u32 %v43_v6, 7  ;;  %s165_s0 = smov [#allocation8]  }
  0x10   :  { %v35_v4 = vrot.slane %v34_v3, 4  ;;  %s97_s11 = sshll.u32 %s165_s0, 4  ;;  %s98_s11 = int_to_ptr.vmem [resolvable:$true] %s97_s11 }
  0x11   :  { %v45_v13 = vsub.s32 0, %v44_v9  ;;  %s138_s12 = scalar_lea.vmem %s98_s11, 16  ;;  %s142_s13 = scalar_lea.vmem %s98_s11, 32 }
  0x12   :  { %v36_v5 = vmax.f32 %v34_v3, %v35_v4  ;;  %p139_p5 = scmp.ne.s32.totalorder %s98_s11, %s138_s12  ;;  %p143_p6 = scmp.lt.s32.totalorder %s98_s11, %s98_s11 }
  0x13   :  { %p144_p7 = scmp.lt.s32.totalorder %s142_s13, %s138_s12 }
  0x14   :  { %v37_v7 = vrot.slane %v36_v5, 2 }
  0x15   :  { %v30_v11 = vld [vmem:[#allocation2] sm:$0x1]  ;;  %v31_v27 = vld [vmem:[#allocation3] sm:$0x1]  ;;  %p145_p8 = por %p144_p7, %p143_p6 }
  0x16   :  { %v38_v8 = vmax.f32 %v36_v5, %v37_v7  ;;  %v32_v34 = vld [vmem:[#allocation4] sm:$0x1] }
  0x17   :  { %p146_p9 = pnand %p145_p8, %p139_p5 }
  0x18   :  { %v39_v10 = vrot.slane %v38_v8, 1 }
  0x1a   :  { %v40_v12 = vmax.f32 %v38_v8, %v39_v10 }
  0x1c   :  { %v41_v14 = vmax.f32 %v30_v11, %v40_v12 }
  0x1e   :  { %v46_v15 = vrot.slane %v41_v14, %v45_v13  ;;  %70 = vst.msk [vmem:[#allocation2] sm:$0x1] %vm25_vm0, %v41_v14  ;;  %v66_v18 = vsub.f32 %v30_v11, %v41_v14 }
  0x20   :  { %v48_v16 = vsub.f32 %v29_v2, %v46_v15  ;;  %v67_v19 = vmul.f32 1.442695, %v66_v18  ;;  %v74_v31 = vmul.f32 %v66_v18, %v31_v27 }
  0x22   :  { %v49_v17 = vmul.f32 1.442695, %v48_v16  ;;  %v75_v40 = vadd.f32 %v74_v31, %v32_v34 }
  0x24   :  { %110 = vpow2.f32 %v49_v17 }
  0x25   :  { %112 = vpow2.f32 %v67_v19 }
  0x31   :  { %v111_v20 = vpop.eup %110 }
  0x32   :  { %v58_v21 = vmul.f32 %v111_v20, %v48_v16  ;;  %v51_v22 = vsel %vm33_vm1, %v111_v20, 0.0  ;;  %v113_v33 = vpop.eup %112 }
  0x33   :  { %v52_v23 = vrot.slane %v51_v22, 4  ;;  %v71_v38 = vmul.f32 %v113_v33, %v31_v27  ;;  %v76_v43 = vmul.f32 %v113_v33, %v75_v40 }
  0x34   :  { %v59_v24 = vsel %vm33_vm1, %v58_v21, 0.0 }
  0x35   :  { %v53_v25 = vadd.f32 %v52_v23, %v51_v22  ;;  %v60_v26 = vrot.slane %v59_v24, 4 }
  0x37   :  { %v54_v28 = vrot.slane %v53_v25, 2  ;;  %v61_v29 = vadd.f32 %v60_v26, %v59_v24 }
  0x39   :  { %v55_v30 = vadd.f32 %v54_v28, %v53_v25  ;;  %v62_v32 = vrot.slane %v61_v29, 2 }
  0x3b   :  { %v56_v35 = vrot.slane %v55_v30, 1  ;;  %v63_v36 = vadd.f32 %v62_v32, %v61_v29 }
  0x3d   :  { %v57_v37 = vadd.f32 %v56_v35, %v55_v30  ;;  %v64_v39 = vrot.slane %v63_v36, 1 }
  0x3f   :  { %v72_v41 = vadd.f32 %v71_v38, %v57_v37  ;;  %v65_v42 = vadd.f32 %v64_v39, %v63_v36 }
  0x41   :  { %73 = vst.msk [vmem:[#allocation3] sm:$0x1] %vm25_vm0, %v72_v41  ;;  %v77_v44 = vadd.f32 %v76_v43, %v65_v42 }
  0x43   :  { %78 = vst.msk [vmem:[#allocation4] sm:$0x1] %vm25_vm0, %v77_v44 }
  0x48   :  { %v82_v45 = vld [vmem:[#allocation3] sm:$0x1] }
  0x49   :  { %114 = vlog2.f32 %v82_v45 }
  0x4a   :  { %116 = vrcp.f32 %v82_v45  ;;  %v85_v49 = vld [vmem:[#allocation4] sm:$0x1] }
  0x56   :  { %v115_v46 = vpop.eup %114 }
  0x57   :  { %v117_v47 = vpop.eup %116  ;;  %v84_v48 = vmul.f32 0.6931472, %v115_v46 }
  0x58   :  { %v87_v50 = vmul.f32 %v117_v47, %v85_v49 }
  0x5a   :  { %v88_v51 = vsub.f32 %v84_v48, %v87_v50 }
  0x5c   :  { %v89_v52 = vmul.f32 1.442695, %v88_v51 }
  0x5e   :  { %90 = vst.msk [vmem:[#allocation8] sm:$0x1] %vm25_vm0, %v89_v52 }
  0x5f   :  { %149 = shalt.err (!%p146_p9)
}
  0x60   :  { %100 = dma.vmem_to_hbm [thread:$0]  %s98_s11, 16, %s193_s1, [#allocation7]  }
  0x61   :  { %160 = dma.done.wait [#allocation7], 16  }
  0x62   :  { %161 = vsyncadd [#allocation7], 4294967280 }
  0x63   :  { %104 = vsyncpa [#allocation6], 1 }
  0x64   :  { %105 = vsyncpa [#allocation7], 1 }

</bundles_post_ra>
